<compile_context>
chip_gen: v7x
topology: tpu7x:2x2x1
jax: 0.10.0
libtpu: 0.0.40
codegen_flags: <defaults>
</compile_context>

<pallas_src>
import functools
import math

import jax
import jax.numpy as jnp
from jax.experimental import pallas as pl
from jax.experimental.pallas import tpu as pltpu

_LANE = 128
_SUBLANE = 8


def _round_up(x, m):
    return (x + m - 1) // m * m


def _mxu_lane_align():
    """256-wide N alignment on v6e/v7x (2x256x256 MXU), 128 elsewhere."""
    try:
        kind = jax.devices()[0].device_kind.lower()
    except Exception:
        return _LANE
    if ("v6" in kind) or ("v7" in kind) or ("7x" in kind):
        return 256
    return _LANE


def _fused_mlp_kernel(x_ref, b_ref, *rest, n_pads):
    """All Linear(+ReLU) stages fused; the running activation never leaves VMEM.

    rest = (w0_ref, ..., w{L-1}_ref, o_ref).  Bias-add / ReLU in f32; the
    activation is cast to the weight dtype (bf16) only right before each dot.
    """
    o_ref = rest[-1]
    w_refs = rest[:-1]
    nlayers = len(w_refs)
    h = x_ref[...]                                   # (tm, k_pad0) f32
    for i, w_ref in enumerate(w_refs):               # static unroll
        n_i = n_pads[i]
        w = w_ref[...]                               # (k_pad_i, n_i) bf16
        b = b_ref[i:i + 1, :n_i]                     # (1, n_i) f32
        hb = h.astype(w.dtype)                       # bf16 feed to the MXU
        h = jnp.dot(hb, w, preferred_element_type=jnp.float32) + b
        if i < nlayers - 1:
            h = jnp.maximum(h, 0.0)                  # ReLU on hidden layers
    o_ref[...] = h.astype(o_ref.dtype)


def init_mlp_params(key, ninput, nh, noutput, nlayers):
    """Deterministic init mirroring nn.Linear; weights stored (in, out)."""
    if nlayers == 1:
        dims = [(ninput, noutput)]
    else:
        dims = [(ninput, nh)] + [(nh, nh)] * (nlayers - 2) + [(nh, noutput)]
    params = []
    for fan_in, fan_out in dims:
        key, kw, kb = jax.random.split(key, 3)
        bound = 1.0 / math.sqrt(fan_in)
        w = jax.random.uniform(kw, (fan_in, fan_out), jnp.float32, -bound, bound)
        b = jax.random.uniform(kb, (fan_out,), jnp.float32, -bound, bound)
        params.append((w, b))
    return params


def pad_params(params, ninput, *, n_align=None, weight_dtype=jnp.bfloat16):
    """Zero-pad feature dims to lane/MXU-aligned widths; cast weights to bf16.

    First-layer K is padded to a 128-lane multiple (x is padded to match in
    the wrapper).  Padded lanes carry exact zeros through every layer, so the
    real output slice is unaffected.  Biases stay f32 (added in f32)."""
    if n_align is None:
        n_align = _mxu_lane_align()
    padded = []
    k_pad = _round_up(ninput, _LANE)
    for w, b in params:
        fan_in, fan_out = w.shape
        n_pad = _round_up(fan_out, n_align)
        w_p = jnp.zeros((k_pad, n_pad), jnp.float32).at[:fan_in, :fan_out].set(w)
        b_p = jnp.zeros((n_pad,), jnp.float32).at[:fan_out].set(b)
        padded.append((w_p.astype(weight_dtype), b_p))
        k_pad = n_pad
    return padded


def mlp_forward(x, padded_params, ninput, noutput, *, tm_cap=256,
                single_buffer_weights=True):
    """One pallas_call for the whole MLP: resident (single-buffered) weights,
    bias stack in one block, rows-only parallel grid."""
    nlayers = len(padded_params)
    weights = [w for w, _ in padded_params]
    k_pad0 = weights[0].shape[0]
    n_pads = tuple(w.shape[1] for w in weights)
    n_pad_out = n_pads[-1]
    n_pad_max = max(n_pads)

    h = x.reshape(-1, ninput).astype(jnp.float32)
    m = h.shape[0]
    if k_pad0 != ninput:                              # lane-align first-layer K
        h = jnp.pad(h, ((0, 0), (0, k_pad0 - ninput)))

    # Row tiling: clamp tm_cap to a sublane multiple, balance tiles before
    # re-rounding m_pad, and use >=2 grid steps when possible (v7x 2nd core).
    tm_cap = max(_SUBLANE, _round_up(int(tm_cap), _SUBLANE))
    m_pad = _round_up(max(m, _SUBLANE), _SUBLANE)
    ntiles = pl.cdiv(m_pad, tm_cap)
    if m_pad >= 2 * _SUBLANE:
        ntiles = max(ntiles, 2)
    tm = _round_up(pl.cdiv(m_pad, ntiles), _SUBLANE)
    m_pad = _round_up(m_pad, tm)
    if m_pad != m:
        h = jnp.pad(h, ((0, m_pad - m), (0, 0)))

    # Pack all biases into one (nlayers, n_pad_max) f32 block.
    b_stack = jnp.zeros((nlayers, n_pad_max), jnp.float32)
    for i, (_, b) in enumerate(padded_params):
        b_stack = b_stack.at[i, :b.shape[0]].set(b)

    # Cost estimate + explicit VMEM budget.
    flops = 0
    w_bytes = 0
    for w in weights:
        flops += 2 * m_pad * w.shape[0] * w.shape[1]
        w_bytes += w.size * w.dtype.itemsize
    bytes_accessed = (h.size * 4 + m_pad * n_pad_out * 4
                      + b_stack.size * 4 + w_bytes)
    weight_buf = 1 if single_buffer_weights else 2
    needed = (weight_buf * (w_bytes + b_stack.size * 4)
              + 2 * tm * (k_pad0 + n_pad_out) * 4        # double-buffered x / out
              + 4 * tm * n_pad_max * 4                   # fused-intermediate headroom
              + (4 << 20))
    vmem_limit = int(min(64 << 20, max(32 << 20, needed)))

    def _invariant_spec(shape, sb):
        idx = lambda i: (0,) * len(shape)                # grid-invariant block
        if sb:
            return pl.BlockSpec(shape, idx, pipeline_mode=pl.Buffered(1))
        return pl.BlockSpec(shape, idx)

    def _run(sb):
        in_specs = [pl.BlockSpec((tm, k_pad0), lambda i: (i, 0)),
                    _invariant_spec(b_stack.shape, sb)]
        in_specs += [_invariant_spec(w.shape, sb) for w in weights]
        return pl.pallas_call(
            functools.partial(_fused_mlp_kernel, n_pads=n_pads),
            out_shape=jax.ShapeDtypeStruct((m_pad, n_pad_out), jnp.float32),
            grid=(m_pad // tm,),
            in_specs=in_specs,
            out_specs=pl.BlockSpec((tm, n_pad_out), lambda i: (i, 0)),
            compiler_params=pltpu.CompilerParams(
                dimension_semantics=("parallel",),
                vmem_limit_bytes=vmem_limit),
            cost_estimate=pl.CostEstimate(
                flops=flops, transcendentals=0, bytes_accessed=bytes_accessed),
        )(h, b_stack, *weights)

    if single_buffer_weights:
        try:
            out = _run(True)
        except Exception:
            # Backend rejected single-buffering of invariant blocks; fall back.
            out = _run(False)
    else:
        out = _run(False)

    # Strip row padding and the lane padding of the last layer.
    return out[:m, :noutput]


if __name__ == "__main__":
    ninput, nh, noutput, nlayers = 32, 64, 16, 3

    key = jax.random.PRNGKey(0)
    key, kx = jax.random.split(key)
    # x of shape (2, 4, 32) -> view(-1, 32) gives (8, 32)
    x = jax.random.normal(kx, (2, 4, ninput), dtype=jnp.float32)

    params = init_mlp_params(key, ninput, nh, noutput, nlayers)
    padded = pad_params(params, ninput)

    out = mlp_forward(x, padded, ninput, noutput)
    out = jax.block_until_ready(out)

    # Plain-JAX reference with the same bf16 weight/activation quantization
    # (f32 accumulation), matching the kernel's MXU numerics.
    h_ref = x.reshape(-1, ninput)
    for i, (w, b) in enumerate(params):
        wq = w.astype(jnp.bfloat16).astype(jnp.float32)
        hq = h_ref.astype(jnp.bfloat16).astype(jnp.float32)
        h_ref = hq @ wq + b
        if i < nlayers - 1:
            h_ref = jnp.maximum(h_ref, 0.0)

    assert out.shape == (8, noutput)
    assert jnp.allclose(out, h_ref, atol=1e-4, rtol=1e-4)

    print("KERNEL_OK")
</pallas_src>

<mosaic_0001>
module attributes {stable_mosaic.version = 11 : i64} {
  func.func @_fused_mlp_kernel(%arg0: i32, %arg1: memref<8x128xf32, #tpu.memory_space<vmem>>, %arg2: memref<3x128xf32, #tpu.memory_space<vmem>>, %arg3: memref<128x128xbf16, #tpu.memory_space<vmem>>, %arg4: memref<128x128xbf16, #tpu.memory_space<vmem>>, %arg5: memref<128x128xbf16, #tpu.memory_space<vmem>>, %arg6: memref<8x128xf32, #tpu.memory_space<vmem>>) attributes {dimension_semantics = [#tpu.dimension_semantics<parallel>], iteration_bounds = array<i64: 1>, scalar_prefetch = 0 : i64, scratch_operands = 0 : i64, tpu.core_type = #tpu.core_type<tc>, window_params = [{transform_indices = @transform_0, window_bounds = array<i64: 8, 128>}, {pipeline_mode = #tpu.pipeline_mode<synchronous>, transform_indices = @transform_1, window_bounds = array<i64: 3, 128>}, {pipeline_mode = #tpu.pipeline_mode<synchronous>, transform_indices = @transform_2, window_bounds = array<i64: 128, 128>}, {pipeline_mode = #tpu.pipeline_mode<synchronous>, transform_indices = @transform_3, window_bounds = array<i64: 128, 128>}, {pipeline_mode = #tpu.pipeline_mode<synchronous>, transform_indices = @transform_4, window_bounds = array<i64: 128, 128>}, {transform_indices = @transform_5, window_bounds = array<i64: 8, 128>}]} {
    %c0 = arith.constant 0 : index
    %c0_0 = arith.constant 0 : index
    %0 = vector.load %arg1[%c0, %c0_0] : memref<8x128xf32, #tpu.memory_space<vmem>>, vector<8x128xf32>
    %c0_1 = arith.constant 0 : index
    %c0_2 = arith.constant 0 : index
    %1 = vector.load %arg3[%c0_1, %c0_2] : memref<128x128xbf16, #tpu.memory_space<vmem>>, vector<128x128xbf16>
    %c0_3 = arith.constant 0 : index
    %c0_4 = arith.constant 0 : index
    %2 = vector.load %arg2[%c0_3, %c0_4] : memref<3x128xf32, #tpu.memory_space<vmem>>, vector<1x128xf32>
    %3 = arith.truncf %0 : vector<8x128xf32> to vector<8x128xbf16>
    %cst = arith.constant dense<0.000000e+00> : vector<8x128xf32>
    %4 = tpu.matmul %3, %1, %cst {dimension_numbers = #tpu.dot_dimension_numbers<[1], [0], [0], [1], [0, 0, 1, 1], [], []>} : vector<8x128xbf16>, vector<128x128xbf16>, vector<8x128xf32> -> vector<8x128xf32>
    %5 = vector.broadcast %2 : vector<1x128xf32> to vector<8x128xf32>
    %6 = arith.addf %4, %5 : vector<8x128xf32>
    %cst_5 = arith.constant 0.000000e+00 : f32
    %7 = vector.broadcast %cst_5 : f32 to vector<8x128xf32>
    %8 = arith.maximumf %6, %7 : vector<8x128xf32>
    %c0_6 = arith.constant 0 : index
    %c0_7 = arith.constant 0 : index
    %9 = vector.load %arg4[%c0_6, %c0_7] : memref<128x128xbf16, #tpu.memory_space<vmem>>, vector<128x128xbf16>
    %c1 = arith.constant 1 : index
    %c0_8 = arith.constant 0 : index
    %10 = vector.load %arg2[%c1, %c0_8] : memref<3x128xf32, #tpu.memory_space<vmem>>, vector<1x128xf32>
    %11 = arith.truncf %8 : vector<8x128xf32> to vector<8x128xbf16>
    %cst_9 = arith.constant dense<0.000000e+00> : vector<8x128xf32>
    %12 = tpu.matmul %11, %9, %cst_9 {dimension_numbers = #tpu.dot_dimension_numbers<[1], [0], [0], [1], [0, 0, 1, 1], [], []>} : vector<8x128xbf16>, vector<128x128xbf16>, vector<8x128xf32> -> vector<8x128xf32>
    %13 = vector.broadcast %10 : vector<1x128xf32> to vector<8x128xf32>
    %14 = arith.addf %12, %13 : vector<8x128xf32>
    %cst_10 = arith.constant 0.000000e+00 : f32
    %15 = vector.broadcast %cst_10 : f32 to vector<8x128xf32>
    %16 = arith.maximumf %14, %15 : vector<8x128xf32>
    %c0_11 = arith.constant 0 : index
    %c0_12 = arith.constant 0 : index
    %17 = vector.load %arg5[%c0_11, %c0_12] : memref<128x128xbf16, #tpu.memory_space<vmem>>, vector<128x128xbf16>
    %c2 = arith.constant 2 : index
    %c0_13 = arith.constant 0 : index
    %18 = vector.load %arg2[%c2, %c0_13] : memref<3x128xf32, #tpu.memory_space<vmem>>, vector<1x128xf32>
    %19 = arith.truncf %16 : vector<8x128xf32> to vector<8x128xbf16>
    %cst_14 = arith.constant dense<0.000000e+00> : vector<8x128xf32>
    %20 = tpu.matmul %19, %17, %cst_14 {dimension_numbers = #tpu.dot_dimension_numbers<[1], [0], [0], [1], [0, 0, 1, 1], [], []>} : vector<8x128xbf16>, vector<128x128xbf16>, vector<8x128xf32> -> vector<8x128xf32>
    %21 = vector.broadcast %18 : vector<1x128xf32> to vector<8x128xf32>
    %22 = arith.addf %20, %21 : vector<8x128xf32>
    %c0_15 = arith.constant 0 : index
    %c0_16 = arith.constant 0 : index
    %23 = vector.load %arg6[%c0_15, %c0_16] : memref<8x128xf32, #tpu.memory_space<vmem>>, vector<8x128xf32>
    tpu.vector_store %arg6[%c0_15, %c0_16], %22 {strides = array<i32>} : memref<8x128xf32, #tpu.memory_space<vmem>>, vector<8x128xf32>,
    return
  }
  func.func @transform_0(%arg0: i32) -> (i32, i32) {
    %c0_i32 = arith.constant 0 : i32
    %c0_i32_0 = arith.constant 0 : i32
    return %arg0, %c0_i32 : i32, i32
  }
  func.func @transform_1(%arg0: i32) -> (i32, i32) {
    %c0_i32 = arith.constant 0 : i32
    %c0_i32_0 = arith.constant 0 : i32
    %c0_i32_1 = arith.constant 0 : i32
    return %c0_i32, %c0_i32_0 : i32, i32
  }
  func.func @transform_2(%arg0: i32) -> (i32, i32) {
    %c0_i32 = arith.constant 0 : i32
    %c0_i32_0 = arith.constant 0 : i32
    %c0_i32_1 = arith.constant 0 : i32
    return %c0_i32, %c0_i32_0 : i32, i32
  }
  func.func @transform_3(%arg0: i32) -> (i32, i32) {
    %c0_i32 = arith.constant 0 : i32
    %c0_i32_0 = arith.constant 0 : i32
    %c0_i32_1 = arith.constant 0 : i32
    return %c0_i32, %c0_i32_0 : i32, i32
  }
  func.func @transform_4(%arg0: i32) -> (i32, i32) {
    %c0_i32 = arith.constant 0 : i32
    %c0_i32_0 = arith.constant 0 : i32
    %c0_i32_1 = arith.constant 0 : i32
    return %c0_i32, %c0_i32_0 : i32, i32
  }
  func.func @transform_5(%arg0: i32) -> (i32, i32) {
    %c0_i32 = arith.constant 0 : i32
    %c0_i32_0 = arith.constant 0 : i32
    return %arg0, %c0_i32 : i32, i32
  }
}

module attributes {stable_mosaic.version = 11 : i64} {
  func.func @_fused_mlp_kernel(%arg0: i32, %arg1: memref<8x128xf32, #tpu.memory_space<vmem>>, %arg2: memref<3x128xf32, #tpu.memory_space<vmem>>, %arg3: memref<128x128xbf16, #tpu.memory_space<vmem>>, %arg4: memref<128x128xbf16, #tpu.memory_space<vmem>>, %arg5: memref<128x128xbf16, #tpu.memory_space<vmem>>, %arg6: memref<8x128xf32, #tpu.memory_space<vmem>>) attributes {dimension_semantics = [#tpu.dimension_semantics<parallel>], iteration_bounds = array<i64: 1>, scalar_prefetch = 0 : i64, scratch_operands = 0 : i64, tpu.core_type = #tpu.core_type<tc>, window_params = [{transform_indices = @transform_0, window_bounds = array<i64: 8, 128>}, {pipeline_mode = #tpu.pipeline_mode<synchronous>, transform_indices = @transform_1, window_bounds = array<i64: 3, 128>}, {pipeline_mode = #tpu.pipeline_mode<synchronous>, transform_indices = @transform_2, window_bounds = array<i64: 128, 128>}, {pipeline_mode = #tpu.pipeline_mode<synchronous>, transform_indices = @transform_3, window_bounds = array<i64: 128, 128>}, {pipeline_mode = #tpu.pipeline_mode<synchronous>, transform_indices = @transform_4, window_bounds = array<i64: 128, 128>}, {transform_indices = @transform_5, window_bounds = array<i64: 8, 128>}]} {
    %c0 = arith.constant 0 : index
    %c0_0 = arith.constant 0 : index
    %0 = vector.load %arg1[%c0, %c0_0] : memref<8x128xf32, #tpu.memory_space<vmem>>, vector<8x128xf32>
    %c0_1 = arith.constant 0 : index
    %c0_2 = arith.constant 0 : index
    %1 = vector.load %arg3[%c0_1, %c0_2] : memref<128x128xbf16, #tpu.memory_space<vmem>>, vector<128x128xbf16>
    %c0_3 = arith.constant 0 : index
    %c0_4 = arith.constant 0 : index
    %2 = vector.load %arg2[%c0_3, %c0_4] : memref<3x128xf32, #tpu.memory_space<vmem>>, vector<1x128xf32>
    %3 = arith.truncf %0 : vector<8x128xf32> to vector<8x128xbf16>
    %cst = arith.constant dense<0.000000e+00> : vector<8x128xf32>
    %4 = tpu.matmul %3, %1, %cst {dimension_numbers = #tpu.dot_dimension_numbers<[1], [0], [0], [1], [0, 0, 1, 1], [], []>} : vector<8x128xbf16>, vector<128x128xbf16>, vector<8x128xf32> -> vector<8x128xf32>
    %5 = vector.broadcast %2 : vector<1x128xf32> to vector<8x128xf32>
    %6 = arith.addf %4, %5 : vector<8x128xf32>
    %cst_5 = arith.constant 0.000000e+00 : f32
    %7 = vector.broadcast %cst_5 : f32 to vector<8x128xf32>
    %8 = arith.maximumf %6, %7 : vector<8x128xf32>
    %c0_6 = arith.constant 0 : index
    %c0_7 = arith.constant 0 : index
    %9 = vector.load %arg4[%c0_6, %c0_7] : memref<128x128xbf16, #tpu.memory_space<vmem>>, vector<128x128xbf16>
    %c1 = arith.constant 1 : index
    %c0_8 = arith.constant 0 : index
    %10 = vector.load %arg2[%c1, %c0_8] : memref<3x128xf32, #tpu.memory_space<vmem>>, vector<1x128xf32>
    %11 = arith.truncf %8 : vector<8x128xf32> to vector<8x128xbf16>
    %cst_9 = arith.constant dense<0.000000e+00> : vector<8x128xf32>
    %12 = tpu.matmul %11, %9, %cst_9 {dimension_numbers = #tpu.dot_dimension_numbers<[1], [0], [0], [1], [0, 0, 1, 1], [], []>} : vector<8x128xbf16>, vector<128x128xbf16>, vector<8x128xf32> -> vector<8x128xf32>
    %13 = vector.broadcast %10 : vector<1x128xf32> to vector<8x128xf32>
    %14 = arith.addf %12, %13 : vector<8x128xf32>
    %cst_10 = arith.constant 0.000000e+00 : f32
    %15 = vector.broadcast %cst_10 : f32 to vector<8x128xf32>
    %16 = arith.maximumf %14, %15 : vector<8x128xf32>
    %c0_11 = arith.constant 0 : index
    %c0_12 = arith.constant 0 : index
    %17 = vector.load %arg5[%c0_11, %c0_12] : memref<128x128xbf16, #tpu.memory_space<vmem>>, vector<128x128xbf16>
    %c2 = arith.constant 2 : index
    %c0_13 = arith.constant 0 : index
    %18 = vector.load %arg2[%c2, %c0_13] : memref<3x128xf32, #tpu.memory_space<vmem>>, vector<1x128xf32>
    %19 = arith.truncf %16 : vector<8x128xf32> to vector<8x128xbf16>
    %cst_14 = arith.constant dense<0.000000e+00> : vector<8x128xf32>
    %20 = tpu.matmul %19, %17, %cst_14 {dimension_numbers = #tpu.dot_dimension_numbers<[1], [0], [0], [1], [0, 0, 1, 1], [], []>} : vector<8x128xbf16>, vector<128x128xbf16>, vector<8x128xf32> -> vector<8x128xf32>
    %21 = vector.broadcast %18 : vector<1x128xf32> to vector<8x128xf32>
    %22 = arith.addf %20, %21 : vector<8x128xf32>
    %c0_15 = arith.constant 0 : index
    %c0_16 = arith.constant 0 : index
    %23 = vector.load %arg6[%c0_15, %c0_16] : memref<8x128xf32, #tpu.memory_space<vmem>>, vector<8x128xf32>
    tpu.vector_store %arg6[%c0_15, %c0_16], %22 {strides = array<i32>} : memref<8x128xf32, #tpu.memory_space<vmem>>, vector<8x128xf32>,
    return
  }
  func.func @transform_0(%arg0: i32) -> (i32, i32) {
    %c0_i32 = arith.constant 0 : i32
    %c0_i32_0 = arith.constant 0 : i32
    return %arg0, %c0_i32 : i32, i32
  }
  func.func @transform_1(%arg0: i32) -> (i32, i32) {
    %c0_i32 = arith.constant 0 : i32
    %c0_i32_0 = arith.constant 0 : i32
    %c0_i32_1 = arith.constant 0 : i32
    return %c0_i32, %c0_i32_0 : i32, i32
  }
  func.func @transform_2(%arg0: i32) -> (i32, i32) {
    %c0_i32 = arith.constant 0 : i32
    %c0_i32_0 = arith.constant 0 : i32
    %c0_i32_1 = arith.constant 0 : i32
    return %c0_i32, %c0_i32_0 : i32, i32
  }
  func.func @transform_3(%arg0: i32) -> (i32, i32) {
    %c0_i32 = arith.constant 0 : i32
    %c0_i32_0 = arith.constant 0 : i32
    %c0_i32_1 = arith.constant 0 : i32
    return %c0_i32, %c0_i32_0 : i32, i32
  }
  func.func @transform_4(%arg0: i32) -> (i32, i32) {
    %c0_i32 = arith.constant 0 : i32
    %c0_i32_0 = arith.constant 0 : i32
    %c0_i32_1 = arith.constant 0 : i32
    return %c0_i32, %c0_i32_0 : i32, i32
  }
  func.func @transform_5(%arg0: i32) -> (i32, i32) {
    %c0_i32 = arith.constant 0 : i32
    %c0_i32_0 = arith.constant 0 : i32
    return %arg0, %c0_i32 : i32, i32
  }
}

</mosaic_0001>

<bundles_post_ra>
// kernel: tpu_custom_call.1
= control target key start
LH: loop header
LB: loop body
LE: loop exit
PB: predicated region body
PF: predicated region fallthrough
CT: control target
= control target key end

     0   :  { %10 = vsyncpa [#allocation3], 0  ;;  %s876_s0 = inlined_call_operand.hbm [shape: f32[8,128], index: 0, kind: input, shape index: {}]   ;;  %s877_s1 = inlined_call_operand.hbm [shape: f32[3,128], index: 1, kind: input, shape index: {}]   ;;  %s878_s2 = inlined_call_operand.hbm [shape: bf16[128,128], index: 2, kind: input, shape index: {}]   ;;  %s879_s3 = inlined_call_operand.hbm [shape: bf16[128,128], index: 3, kind: input, shape index: {}]   ;;  %s880_s4 = inlined_call_operand.hbm [shape: bf16[128,128], index: 4, kind: input, shape index: {}]   ;;  %s881_s5 = inlined_call_operand.hbm [shape: f32[8,128], index: 5, kind: output, shape index: {}]  }
   0x1   :  { %11 = vsyncpa [#allocation6], 0 }
   0x2   :  { %12 = vsyncpa [#allocation9], 0 }
   0x3   :  { %13 = vsyncpa [#allocation4], 0  ;;  %s725_s18 = smov [#allocation5]   ;;  %s585_s22 = scalar_lea.hbm %s877_s1, 64 }
   0x4   :  { %s30_s19 = sshll.u32 %s725_s18, 4  ;;  %p586_p0 = scmp.ne.s32.totalorder %s877_s1, %s585_s22  ;;  %s31_s19 = int_to_ptr.vmem [resolvable:$true] %s30_s19 }
   0x5   :  { %p589_p1 = scmp.lt.u32.totalorder %s585_s22, %s877_s1 }
   0x7   :  { %p591_p2 = pnand %p589_p1, %p586_p0 }
   0x9   :  { %594 = shalt.err (!%p591_p2)
}
   0xa   :  { %s595_s27 = scalar_lea.vmem %s31_s19, 64  ;;  %p600_p4 = scmp.lt.s32.totalorder %s31_s19, %s31_s19 }
   0xb   :  { %p596_p3 = scmp.ne.s32.totalorder %s31_s19, %s595_s27  ;;  %p601_p5 = scmp.lt.s32.totalorder %s595_s27, %s595_s27 }
   0xd   :  { %p602_p6 = por %p601_p5, %p600_p4 }
   0xf   :  { %p603_p7 = pnand %p602_p6, %p596_p3 }
  0x11   :  { %606 = shalt.err (!%p603_p7)
}
  0x12   :  { %33 = dma.hbm_to_vmem [thread:$0]  %s877_s1, 64, %s31_s19, [#allocation6]  }
  0x13   :  { %s726_s30 = smov [#allocation8]   ;;  %s727_s7 = smov [#allocation2]  }
  0x14   :  { %s51_s6 = sshll.u32 %s726_s30, 4  ;;  %s20_s8 = sshll.u32 %s727_s7, 4  ;;  %s52_s6 = int_to_ptr.vmem [resolvable:$true] %s51_s6  ;;  %s21_s8 = int_to_ptr.vmem [resolvable:$true] %s20_s8 }
  0x15   :  { %s607_s11 = scalar_lea.hbm %s879_s3, 1024 }
  0x16   :  { %p608_p8 = scmp.ne.s32.totalorder %s879_s3, %s607_s11  ;;  %p611_p9 = scmp.lt.u32.totalorder %s607_s11, %s879_s3 }
  0x18   :  { %p613_p10 = pnand %p611_p9, %p608_p8 }
  0x1a   :  { %616 = shalt.err (!%p613_p10)
}
  0x1b   :  { %s617_s1 = scalar_lea.vmem %s52_s6, 1024  ;;  %p622_p12 = scmp.lt.s32.totalorder %s52_s6, %s52_s6 }
  0x1c   :  { %p618_p11 = scmp.ne.s32.totalorder %s52_s6, %s617_s1  ;;  %p623_p13 = scmp.lt.s32.totalorder %s617_s1, %s617_s1 }
  0x1e   :  { %p624_p0 = por %p623_p13, %p622_p12 }
  0x20   :  { %p625_p1 = pnand %p624_p0, %p618_p11 }
  0x22   :  { %628 = shalt.err (!%p625_p1)
}
  0x23   :  { %s728_s16 = smov 64   ;;  %s729_s17 = smov 4  }
  0x24   :  { %57 = dma.hbm_to_vmem [thread:$0]  %s879_s3, 1024, %s52_s6, [#allocation9], %s728_s16, %s728_s16, %s729_s17  }
  0x25   :  { %s629_s22 = scalar_lea.hbm %s876_s0, 128 }
  0x26   :  { %p630_p2 = scmp.ne.s32.totalorder %s876_s0, %s629_s22  ;;  %p633_p3 = scmp.lt.u32.totalorder %s629_s22, %s876_s0 }
  0x28   :  { %p635_p4 = pnand %p633_p3, %p630_p2 }
  0x2a   :  { %638 = shalt.err (!%p635_p4)
}
  0x2b   :  { %s639_s27 = scalar_lea.vmem %s21_s8, 128  ;;  %p644_p6 = scmp.lt.s32.totalorder %s21_s8, %s21_s8 }
  0x2c   :  { %p640_p5 = scmp.ne.s32.totalorder %s21_s8, %s639_s27  ;;  %p645_p7 = scmp.lt.s32.totalorder %s639_s27, %s639_s27 }
  0x2e   :  { %p646_p8 = por %p645_p7, %p644_p6 }
  0x30   :  { %p647_p9 = pnand %p646_p8, %p640_p5 }
  0x32   :  { %650 = shalt.err (!%p647_p9)
}
  0x33   :  { %23 = dma.hbm_to_vmem [thread:$0]  %s876_s0, 128, %s21_s8, [#allocation3]  }
  0x34   :  { %s730_s29 = smov [#allocation7]   ;;  %s731_s6 = smov [#allocation10]  }
  0x35   :  { %s39_s30 = sshll.u32 %s730_s29, 4  ;;  %s63_s7 = sshll.u32 %s731_s6, 4  ;;  %s40_s30 = int_to_ptr.vmem [resolvable:$true] %s39_s30  ;;  %s64_s7 = int_to_ptr.vmem [resolvable:$true] %s63_s7 }
  0x36   :  { %s651_s11 = scalar_lea.hbm %s878_s2, 1024 }
  0x37   :  { %p652_p10 = scmp.ne.s32.totalorder %s878_s2, %s651_s11  ;;  %p655_p11 = scmp.lt.u32.totalorder %s651_s11, %s878_s2 }
  0x39   :  { %p657_p12 = pnand %p655_p11, %p652_p10 }
  0x3b   :  { %660 = shalt.err (!%p657_p12)
}
  0x3c   :  { %s661_s0 = scalar_lea.vmem %s40_s30, 1024  ;;  %p666_p0 = scmp.lt.s32.totalorder %s40_s30, %s40_s30 }
  0x3d   :  { %p662_p13 = scmp.ne.s32.totalorder %s40_s30, %s661_s0  ;;  %p667_p1 = scmp.lt.s32.totalorder %s661_s0, %s661_s0 }
  0x3f   :  { %p668_p2 = por %p667_p1, %p666_p0 }
  0x41   :  { %p669_p3 = pnand %p668_p2, %p662_p13 }
  0x43   :  { %672 = shalt.err (!%p669_p3)
}
  0x44   :  { %45 = dma.hbm_to_vmem [thread:$0]  %s878_s2, 1024, %s40_s30, [#allocation6], %s728_s16, %s728_s16, %s729_s17  }
  0x45   :  { %s673_s20 = scalar_lea.hbm %s880_s4, 1024 }
  0x46   :  { %p674_p4 = scmp.ne.s32.totalorder %s880_s4, %s673_s20  ;;  %p677_p5 = scmp.lt.u32.totalorder %s673_s20, %s880_s4 }
  0x48   :  { %p679_p6 = pnand %p677_p5, %p674_p4 }
  0x4a   :  { %682 = shalt.err (!%p679_p6)
}
  0x4b   :  { %s683_s25 = scalar_lea.vmem %s64_s7, 1024  ;;  %p688_p8 = scmp.lt.s32.totalorder %s64_s7, %s64_s7 }
  0x4c   :  { %p684_p7 = scmp.ne.s32.totalorder %s64_s7, %s683_s25  ;;  %p689_p9 = scmp.lt.s32.totalorder %s683_s25, %s683_s25 }
  0x4e   :  { %p690_p10 = por %p689_p9, %p688_p8 }
  0x50   :  { %p691_p11 = pnand %p690_p10, %p684_p7 }
  0x52   :  { %694 = shalt.err (!%p691_p11)
}
  0x53   :  { %69 = dma.hbm_to_vmem [thread:$0]  %s880_s4, 1024, %s64_s7, [#allocation9], %s728_s16, %s728_s16, %s729_s17  }
  0x54   :  { %717 = dma.done.wait [#allocation3], 128  }
  0x55   :  { %718 = vsyncadd [#allocation3], 4294967168 }
  0x56   :  { %719 = dma.done.wait [#allocation6], 1088  }
  0x57   :  { %720 = vsyncadd [#allocation6], 4294966208 }
  0x58   :  { %721 = dma.done.wait [#allocation9], 2048  }
  0x59   :  { %722 = vsyncadd [#allocation9], 4294965248  ;;  %v732_v0 = vmov 0.0   ;;  %vm733_vm0 = vmmov 0   ;;  %v561_v1 = vld [vmem:[#allocation7] sm:$0xff]   ;;  %v562_v2 = vld [vmem:[#allocation7 + $0x8] sm:$0xff]  }
  0x5a   :  { %491 = vmatprep.subr.bf16.mxu0 %v732_v0  ;;  %507 = vmatprep.mubr.msk.bf16.mxu0 %vm733_vm0, %v732_v0  ;;  %v563_v3 = vld [vmem:[#allocation7 + $0x10] sm:$0xff]   ;;  %v569_v4 = vld [vmem:[#allocation8] sm:$0xff]   ;;  %v564_v5 = vld [vmem:[#allocation7 + $0x18] sm:$0xff]   ;;  %s734_s4 = smov [#allocation11]  }
  0x5b   :  { %511 = vmatprep.subr.bf16.mxu1 %v732_v0  ;;  %527 = vmatprep.mubr.msk.bf16.mxu1 %vm733_vm0, %v732_v0  ;;  %v570_v6 = vld [vmem:[#allocation8 + $0x8] sm:$0xff]   ;;  %v565_v7 = vld [vmem:[#allocation7 + $0x20] sm:$0xff]   ;;  %v571_v8 = vld [vmem:[#allocation8 + $0x10] sm:$0xff]   ;;  %s426_s16 = sshll.u32 %s734_s4, 4  ;;  %s427_s16 = int_to_ptr.vmem [resolvable:$true] %s426_s16 }
  0x5c   :  { %492 = vmatpush3.bf16.msra.mxu0 %v561_v1  ;;  %512 = vmatpush3.bf16.msra.mxu1 %v569_v4  ;;  %v566_v9 = vld [vmem:[#allocation7 + $0x28] sm:$0xff]   ;;  %v572_v10 = vld [vmem:[#allocation8 + $0x18] sm:$0xff]   ;;  %v567_v11 = vld [vmem:[#allocation7 + $0x30] sm:$0xff]   ;;  %s695_s17 = scalar_lea.vmem %s427_s16, 128  ;;  %p700_p13 = scmp.lt.s32.totalorder %s427_s16, %s427_s16 }
  0x5d   :  { %493 = vmatprep.subr.bf16.mxu0 %v732_v0  ;;  %513 = vmatprep.subr.bf16.mxu1 %v732_v0  ;;  %v573_v12 = vld [vmem:[#allocation8 + $0x20] sm:$0xff]   ;;  %v568_v13 = vld [vmem:[#allocation7 + $0x38] sm:$0xff]   ;;  %v574_v15 = vld [vmem:[#allocation8 + $0x28] sm:$0xff]   ;;  %p696_p12 = scmp.ne.s32.totalorder %s427_s16, %s695_s17  ;;  %p701_p0 = scmp.lt.s32.totalorder %s695_s17, %s695_s17 }
  0x5e   :  { %v86_v14 = vld [vmem:[#allocation2] sm:$0xff]  ;;  %v577_v19 = vld [vmem:[#allocation10] sm:$0xff]   ;;  %v578_v20 = vld [vmem:[#allocation10 + $0x8] sm:$0xff]  }
  0x5f   :  { %v104_v16 = vpack.c.bf16 %v86_v14, %v86_v14  ;;  %v575_v17 = vld [vmem:[#allocation8 + $0x30] sm:$0xff]   ;;  %v576_v18 = vld [vmem:[#allocation8 + $0x38] sm:$0xff]   ;;  %v581_v23 = vld [vmem:[#allocation10 + $0x20] sm:$0xff]   ;;  %p702_p1 = por %p701_p0, %p700_p13 }
  0x60   :  { %494 = vmatpush3.bf16.msra.mxu0 %v562_v2  ;;  %514 = vmatpush3.bf16.msra.mxu1 %v570_v6  ;;  %v579_v21 = vld [vmem:[#allocation10 + $0x10] sm:$0xff]   ;;  %v580_v22 = vld [vmem:[#allocation10 + $0x18] sm:$0xff]   ;;  %v582_v24 = vld [vmem:[#allocation10 + $0x28] sm:$0xff]  }
  0x61   :  { %495 = vmatprep.subr.bf16.mxu0 %v732_v0  ;;  %515 = vmatprep.subr.bf16.mxu1 %v732_v0  ;;  %v437_v25 = vld [vmem:[#allocation5] ss:$0 sm:$0xff]  ;;  %v583_v33 = vld [vmem:[#allocation10 + $0x30] sm:$0xff]   ;;  %v446_v35 = vld [vmem:[#allocation5 + $0x1] ss:$0 sm:$0xff]  ;;  %p703_p2 = pnand %p702_p1, %p696_p12 }
  0x62   :  { %v584_v34 = vld [vmem:[#allocation10 + $0x38] sm:$0xff]  }
  0x63   :  { %v455_v43 = vld [vmem:[#allocation5 + $0x2] ss:$0 sm:$0xff] }
  0x64   :  { %496 = vmatpush3.bf16.msra.mxu0 %v563_v3  ;;  %516 = vmatpush3.bf16.msra.mxu1 %v571_v8 }
  0x65   :  { %497 = vmatprep.subr.bf16.mxu0 %v732_v0  ;;  %517 = vmatprep.subr.bf16.mxu1 %v732_v0 }
  0x68   :  { %498 = vmatpush3.bf16.msra.mxu0 %v564_v5  ;;  %518 = vmatpush3.bf16.msra.mxu1 %v572_v10 }
  0x69   :  { %499 = vmatprep.subr.bf16.mxu0 %v732_v0  ;;  %519 = vmatprep.subr.bf16.mxu1 %v732_v0 }
  0x6c   :  { %500 = vmatpush3.bf16.msra.mxu0 %v565_v7  ;;  %520 = vmatpush3.bf16.msra.mxu1 %v573_v12 }
  0x6d   :  { %501 = vmatprep.subr.bf16.mxu0 %v732_v0  ;;  %521 = vmatprep.subr.bf16.mxu1 %v732_v0 }
  0x70   :  { %502 = vmatpush3.bf16.msra.mxu0 %v566_v9  ;;  %522 = vmatpush3.bf16.msra.mxu1 %v574_v15 }
  0x71   :  { %503 = vmatprep.subr.bf16.mxu0 %v732_v0  ;;  %523 = vmatprep.subr.bf16.mxu1 %v732_v0 }
  0x74   :  { %504 = vmatpush3.bf16.msra.mxu0 %v567_v11  ;;  %524 = vmatpush3.bf16.msra.mxu1 %v575_v17 }
  0x75   :  { %505 = vmatprep.subr.bf16.mxu0 %v732_v0  ;;  %525 = vmatprep.subr.bf16.mxu1 %v732_v0 }
  0x78   :  { %506 = vmatpush3.bf16.msra.mxu0 %v568_v13  ;;  %526 = vmatpush3.bf16.msra.mxu1 %v576_v18 }
  0x79   :  { %531 = vmatprep.subr.bf16.mxu0 %v732_v0 }
  0x7b   :  { %508 = vmatmul.mubr.bf16.vlgmr.msra.gmra.mrb[0].mxu0 %v104_v16 }
  0x7c   :  { %547 = vmatprep.mubr.msk.bf16.mxu0 %vm733_vm0, %v732_v0  ;;  %532 = vmatpush3.bf16.msra.mxu0 %v577_v19 }
  0x7d   :  { %533 = vmatprep.subr.bf16.mxu0 %v732_v0 }
  0x80   :  { %534 = vmatpush3.bf16.msra.mxu0 %v578_v20 }
  0x81   :  { %535 = vmatprep.subr.bf16.mxu0 %v732_v0 }
  0x84   :  { %536 = vmatpush3.bf16.msra.mxu0 %v579_v21 }
  0x85   :  { %537 = vmatprep.subr.bf16.mxu0 %v732_v0 }
  0x88   :  { %538 = vmatpush3.bf16.msra.mxu0 %v580_v22 }
  0x89   :  { %539 = vmatprep.subr.bf16.mxu0 %v732_v0 }
  0x8c   :  { %540 = vmatpush3.bf16.msra.mxu0 %v581_v23 }
  0x8d   :  { %541 = vmatprep.subr.bf16.mxu0 %v732_v0 }
  0x90   :  { %542 = vmatpush3.bf16.msra.mxu0 %v582_v24 }
  0x91   :  { %543 = vmatprep.subr.bf16.mxu0 %v732_v0 }
  0x94   :  { %544 = vmatpush3.bf16.msra.mxu0 %v583_v33 }
  0x95   :  { %545 = vmatprep.subr.bf16.mxu0 %v732_v0 }
  0x98   :  { %546 = vmatpush3.bf16.msra.mxu0 %v584_v34 }
 0x14e   :  { %v191_v26 = vpop.f32.mrb[0].mxu0 }
 0x14f   :  { %v192_v27 = vadd.f32 %v437_v25, %v191_v26  ;;  %v509_v28 = vpop.f32.mrb[1].mxu0 }
 0x150   :  { %v194_v29 = vpop.f32.mrb[2].mxu0 }
 0x151   :  { %v197_v30 = vmax.f32 %v192_v27, 0.0  ;;  %v510_v31 = vpop.f32.mrb[3].mxu0 }
 0x153   :  { %v215_v32 = vpack.c.bf16 %v197_v30, %v197_v30 }
 0x155   :  { %528 = vmatmul.mubr.bf16.vlgmr.msra.gmra.mrb[0].mxu1 %v215_v32 }
 0x228   :  { %v302_v36 = vpop.f32.mrb[0].mxu1 }
 0x229   :  { %v303_v37 = vadd.f32 %v446_v35, %v302_v36  ;;  %v529_v38 = vpop.f32.mrb[1].mxu1 }
 0x22a   :  { %v305_v39 = vpop.f32.mrb[2].mxu1 }
 0x22b   :  { %v308_v40 = vmax.f32 %v303_v37, 0.0  ;;  %v530_v41 = vpop.f32.mrb[3].mxu1 }
 0x22d   :  { %v326_v42 = vpack.c.bf16 %v308_v40, %v308_v40 }
 0x22f   :  { %548 = vmatmul.mubr.bf16.vlgmr.msra.gmra.mrb[4].mxu0 %v326_v42 }
 0x302   :  { %v413_v44 = vpop.f32.mrb[4].mxu0 }
 0x303   :  { %v414_v45 = vadd.f32 %v455_v43, %v413_v44  ;;  %v549_v46 = vpop.f32.mrb[5].mxu0 }
 0x304   :  { %v416_v47 = vpop.f32.mrb[6].mxu0 }
 0x305   :  { %419 = vst [vmem:[#allocation11] sm:$0xff] %v414_v45  ;;  %v550_v48 = vpop.f32.mrb[7].mxu0 }
 0x306   :  { %706 = shalt.err (!%p703_p2)
}
 0x307   :  { %s707_s28 = scalar_lea.hbm %s881_s5, 128 }
 0x308   :  { %p708_p3 = scmp.ne.s32.totalorder %s881_s5, %s707_s28  ;;  %p711_p4 = scmp.lt.u32.totalorder %s707_s28, %s881_s5 }
 0x30a   :  { %p713_p5 = pnand %p711_p4, %p708_p3 }
 0x30c   :  { %716 = shalt.err (!%p713_p5)
}
 0x30d   :  { %429 = dma.vmem_to_hbm [thread:$0]  %s427_s16, 128, %s881_s5, [#allocation4]  }
 0x30e   :  { %723 = dma.done.wait [#allocation4], 128  }
 0x30f   :  { %724 = vsyncadd [#allocation4], 4294967168 }
 0x310   :  { %433 = vsyncpa [#allocation3], 1 }
 0x311   :  { %434 = vsyncpa [#allocation6], 1 }
 0x312   :  { %435 = vsyncpa [#allocation9], 1 }
 0x313   :  { %436 = vsyncpa [#allocation4], 1 }

// kernel: tpu_custom_call.1
= control target key start
LH: loop header
LB: loop body
LE: loop exit
PB: predicated region body
PF: predicated region fallthrough
CT: control target
= control target key end

     0   :  { %10 = vsyncpa [#allocation3], 0  ;;  %s876_s0 = inlined_call_operand.hbm [shape: f32[8,128], index: 0, kind: input, shape index: {}]   ;;  %s877_s1 = inlined_call_operand.hbm [shape: f32[3,128], index: 1, kind: input, shape index: {}]   ;;  %s878_s2 = inlined_call_operand.hbm [shape: bf16[128,128], index: 2, kind: input, shape index: {}]   ;;  %s879_s3 = inlined_call_operand.hbm [shape: bf16[128,128], index: 3, kind: input, shape index: {}]   ;;  %s880_s4 = inlined_call_operand.hbm [shape: bf16[128,128], index: 4, kind: input, shape index: {}]   ;;  %s881_s5 = inlined_call_operand.hbm [shape: f32[8,128], index: 5, kind: output, shape index: {}]  }
   0x1   :  { %11 = vsyncpa [#allocation6], 0 }
   0x2   :  { %12 = vsyncpa [#allocation9], 0 }
   0x3   :  { %13 = vsyncpa [#allocation4], 0  ;;  %s725_s18 = smov [#allocation5]   ;;  %s585_s22 = scalar_lea.hbm %s877_s1, 64 }
   0x4   :  { %s30_s19 = sshll.u32 %s725_s18, 4  ;;  %p586_p0 = scmp.ne.s32.totalorder %s877_s1, %s585_s22  ;;  %s31_s19 = int_to_ptr.vmem [resolvable:$true] %s30_s19 }
   0x5   :  { %p589_p1 = scmp.lt.u32.totalorder %s585_s22, %s877_s1 }
   0x7   :  { %p591_p2 = pnand %p589_p1, %p586_p0 }
   0x9   :  { %594 = shalt.err (!%p591_p2)
}
   0xa   :  { %s595_s27 = scalar_lea.vmem %s31_s19, 64  ;;  %p600_p4 = scmp.lt.s32.totalorder %s31_s19, %s31_s19 }
   0xb   :  { %p596_p3 = scmp.ne.s32.totalorder %s31_s19, %s595_s27  ;;  %p601_p5 = scmp.lt.s32.totalorder %s595_s27, %s595_s27 }
   0xd   :  { %p602_p6 = por %p601_p5, %p600_p4 }
   0xf   :  { %p603_p7 = pnand %p602_p6, %p596_p3 }
  0x11   :  { %606 = shalt.err (!%p603_p7)
}
  0x12   :  { %33 = dma.hbm_to_vmem [thread:$0]  %s877_s1, 64, %s31_s19, [#allocation6]  }
  0x13   :  { %s726_s30 = smov [#allocation8]   ;;  %s727_s7 = smov [#allocation2]  }
  0x14   :  { %s51_s6 = sshll.u32 %s726_s30, 4  ;;  %s20_s8 = sshll.u32 %s727_s7, 4  ;;  %s52_s6 = int_to_ptr.vmem [resolvable:$true] %s51_s6  ;;  %s21_s8 = int_to_ptr.vmem [resolvable:$true] %s20_s8 }
  0x15   :  { %s607_s11 = scalar_lea.hbm %s879_s3, 1024 }
  0x16   :  { %p608_p8 = scmp.ne.s32.totalorder %s879_s3, %s607_s11  ;;  %p611_p9 = scmp.lt.u32.totalorder %s607_s11, %s879_s3 }
  0x18   :  { %p613_p10 = pnand %p611_p9, %p608_p8 }
  0x1a   :  { %616 = shalt.err (!%p613_p10)
}
  0x1b   :  { %s617_s1 = scalar_lea.vmem %s52_s6, 1024  ;;  %p622_p12 = scmp.lt.s32.totalorder %s52_s6, %s52_s6 }
  0x1c   :  { %p618_p11 = scmp.ne.s32.totalorder %s52_s6, %s617_s1  ;;  %p623_p13 = scmp.lt.s32.totalorder %s617_s1, %s617_s1 }
  0x1e   :  { %p624_p0 = por %p623_p13, %p622_p12 }
  0x20   :  { %p625_p1 = pnand %p624_p0, %p618_p11 }
  0x22   :  { %628 = shalt.err (!%p625_p1)
}
  0x23   :  { %s728_s16 = smov 64   ;;  %s729_s17 = smov 4  }
  0x24   :  { %57 = dma.hbm_to_vmem [thread:$0]  %s879_s3, 1024, %s52_s6, [#allocation9], %s728_s16, %s728_s16, %s729_s17  }
  0x25   :  { %s629_s22 = scalar_lea.hbm %s876_s0, 128 }
  0x26   :  { %p630_p2 = scmp.ne.s32.totalorder %s876_s0, %s629_s22  ;;  %p633_p3 = scmp.lt.u32.totalorder %s629_s22, %s876_s0 }
  0x28   :  { %p635_p4 = pnand %p633_p3, %p630_p2 }
  0x2a   :  { %638 = shalt.err (!%p635_p4)
}
  0x2b   :  { %s639_s27 = scalar_lea.vmem %s21_s8, 128  ;;  %p644_p6 = scmp.lt.s32.totalorder %s21_s8, %s21_s8 }
  0x2c   :  { %p640_p5 = scmp.ne.s32.totalorder %s21_s8, %s639_s27  ;;  %p645_p7 = scmp.lt.s32.totalorder %s639_s27, %s639_s27 }
  0x2e   :  { %p646_p8 = por %p645_p7, %p644_p6 }
  0x30   :  { %p647_p9 = pnand %p646_p8, %p640_p5 }
  0x32   :  { %650 = shalt.err (!%p647_p9)
}
  0x33   :  { %23 = dma.hbm_to_vmem [thread:$0]  %s876_s0, 128, %s21_s8, [#allocation3]  }
  0x34   :  { %s730_s29 = smov [#allocation7]   ;;  %s731_s6 = smov [#allocation10]  }
  0x35   :  { %s39_s30 = sshll.u32 %s730_s29, 4  ;;  %s63_s7 = sshll.u32 %s731_s6, 4  ;;  %s40_s30 = int_to_ptr.vmem [resolvable:$true] %s39_s30  ;;  %s64_s7 = int_to_ptr.vmem [resolvable:$true] %s63_s7 }
  0x36   :  { %s651_s11 = scalar_lea.hbm %s878_s2, 1024 }
  0x37   :  { %p652_p10 = scmp.ne.s32.totalorder %s878_s2, %s651_s11  ;;  %p655_p11 = scmp.lt.u32.totalorder %s651_s11, %s878_s2 }
  0x39   :  { %p657_p12 = pnand %p655_p11, %p652_p10 }
  0x3b   :  { %660 = shalt.err (!%p657_p12)
}
  0x3c   :  { %s661_s0 = scalar_lea.vmem %s40_s30, 1024  ;;  %p666_p0 = scmp.lt.s32.totalorder %s40_s30, %s40_s30 }
  0x3d   :  { %p662_p13 = scmp.ne.s32.totalorder %s40_s30, %s661_s0  ;;  %p667_p1 = scmp.lt.s32.totalorder %s661_s0, %s661_s0 }
  0x3f   :  { %p668_p2 = por %p667_p1, %p666_p0 }
  0x41   :  { %p669_p3 = pnand %p668_p2, %p662_p13 }
  0x43   :  { %672 = shalt.err (!%p669_p3)
}
  0x44   :  { %45 = dma.hbm_to_vmem [thread:$0]  %s878_s2, 1024, %s40_s30, [#allocation6], %s728_s16, %s728_s16, %s729_s17  }
  0x45   :  { %s673_s20 = scalar_lea.hbm %s880_s4, 1024 }
  0x46   :  { %p674_p4 = scmp.ne.s32.totalorder %s880_s4, %s673_s20  ;;  %p677_p5 = scmp.lt.u32.totalorder %s673_s20, %s880_s4 }
  0x48   :  { %p679_p6 = pnand %p677_p5, %p674_p4 }
  0x4a   :  { %682 = shalt.err (!%p679_p6)
}
  0x4b   :  { %s683_s25 = scalar_lea.vmem %s64_s7, 1024  ;;  %p688_p8 = scmp.lt.s32.totalorder %s64_s7, %s64_s7 }
  0x4c   :  { %p684_p7 = scmp.ne.s32.totalorder %s64_s7, %s683_s25  ;;  %p689_p9 = scmp.lt.s32.totalorder %s683_s25, %s683_s25 }
  0x4e   :  { %p690_p10 = por %p689_p9, %p688_p8 }
  0x50   :  { %p691_p11 = pnand %p690_p10, %p684_p7 }
  0x52   :  { %694 = shalt.err (!%p691_p11)
}
  0x53   :  { %69 = dma.hbm_to_vmem [thread:$0]  %s880_s4, 1024, %s64_s7, [#allocation9], %s728_s16, %s728_s16, %s729_s17  }
  0x54   :  { %717 = dma.done.wait [#allocation3], 128  }
  0x55   :  { %718 = vsyncadd [#allocation3], 4294967168 }
  0x56   :  { %719 = dma.done.wait [#allocation6], 1088  }
  0x57   :  { %720 = vsyncadd [#allocation6], 4294966208 }
  0x58   :  { %721 = dma.done.wait [#allocation9], 2048  }
  0x59   :  { %722 = vsyncadd [#allocation9], 4294965248  ;;  %v732_v0 = vmov 0.0   ;;  %vm733_vm0 = vmmov 0   ;;  %v561_v1 = vld [vmem:[#allocation7] sm:$0xff]   ;;  %v562_v2 = vld [vmem:[#allocation7 + $0x8] sm:$0xff]  }
  0x5a   :  { %491 = vmatprep.subr.bf16.mxu0 %v732_v0  ;;  %507 = vmatprep.mubr.msk.bf16.mxu0 %vm733_vm0, %v732_v0  ;;  %v563_v3 = vld [vmem:[#allocation7 + $0x10] sm:$0xff]   ;;  %v569_v4 = vld [vmem:[#allocation8] sm:$0xff]   ;;  %v564_v5 = vld [vmem:[#allocation7 + $0x18] sm:$0xff]   ;;  %s734_s4 = smov [#allocation11]  }
  0x5b   :  { %511 = vmatprep.subr.bf16.mxu1 %v732_v0  ;;  %527 = vmatprep.mubr.msk.bf16.mxu1 %vm733_vm0, %v732_v0  ;;  %v570_v6 = vld [vmem:[#allocation8 + $0x8] sm:$0xff]   ;;  %v565_v7 = vld [vmem:[#allocation7 + $0x20] sm:$0xff]   ;;  %v571_v8 = vld [vmem:[#allocation8 + $0x10] sm:$0xff]   ;;  %s426_s16 = sshll.u32 %s734_s4, 4  ;;  %s427_s16 = int_to_ptr.vmem [resolvable:$true] %s426_s16 }
  0x5c   :  { %492 = vmatpush3.bf16.msra.mxu0 %v561_v1  ;;  %512 = vmatpush3.bf16.msra.mxu1 %v569_v4  ;;  %v566_v9 = vld [vmem:[#allocation7 + $0x28] sm:$0xff]   ;;  %v572_v10 = vld [vmem:[#allocation8 + $0x18] sm:$0xff]   ;;  %v567_v11 = vld [vmem:[#allocation7 + $0x30] sm:$0xff]   ;;  %s695_s17 = scalar_lea.vmem %s427_s16, 128  ;;  %p700_p13 = scmp.lt.s32.totalorder %s427_s16, %s427_s16 }
  0x5d   :  { %493 = vmatprep.subr.bf16.mxu0 %v732_v0  ;;  %513 = vmatprep.subr.bf16.mxu1 %v732_v0  ;;  %v573_v12 = vld [vmem:[#allocation8 + $0x20] sm:$0xff]   ;;  %v568_v13 = vld [vmem:[#allocation7 + $0x38] sm:$0xff]   ;;  %v574_v15 = vld [vmem:[#allocation8 + $0x28] sm:$0xff]   ;;  %p696_p12 = scmp.ne.s32.totalorder %s427_s16, %s695_s17  ;;  %p701_p0 = scmp.lt.s32.totalorder %s695_s17, %s695_s17 }
  0x5e   :  { %v86_v14 = vld [vmem:[#allocation2] sm:$0xff]  ;;  %v577_v19 = vld [vmem:[#allocation10] sm:$0xff]   ;;  %v578_v20 = vld [vmem:[#allocation10 + $0x8] sm:$0xff]  }
  0x5f   :  { %v104_v16 = vpack.c.bf16 %v86_v14, %v86_v14  ;;  %v575_v17 = vld [vmem:[#allocation8 + $0x30] sm:$0xff]   ;;  %v576_v18 = vld [vmem:[#allocation8 + $0x38] sm:$0xff]   ;;  %v581_v23 = vld [vmem:[#allocation10 + $0x20] sm:$0xff]   ;;  %p702_p1 = por %p701_p0, %p700_p13 }
  0x60   :  { %494 = vmatpush3.bf16.msra.mxu0 %v562_v2  ;;  %514 = vmatpush3.bf16.msra.mxu1 %v570_v6  ;;  %v579_v21 = vld [vmem:[#allocation10 + $0x10] sm:$0xff]   ;;  %v580_v22 = vld [vmem:[#allocation10 + $0x18] sm:$0xff]   ;;  %v582_v24 = vld [vmem:[#allocation10 + $0x28] sm:$0xff]  }
  0x61   :  { %495 = vmatprep.subr.bf16.mxu0 %v732_v0  ;;  %515 = vmatprep.subr.bf16.mxu1 %v732_v0  ;;  %v437_v25 = vld [vmem:[#allocation5] ss:$0 sm:$0xff]  ;;  %v583_v33 = vld [vmem:[#allocation10 + $0x30] sm:$0xff]   ;;  %v446_v35 = vld [vmem:[#allocation5 + $0x1] ss:$0 sm:$0xff]  ;;  %p703_p2 = pnand %p702_p1, %p696_p12 }
  0x62   :  { %v584_v34 = vld [vmem:[#allocation10 + $0x38] sm:$0xff]  }
  0x63   :  { %v455_v43 = vld [vmem:[#allocation5 + $0x2] ss:$0 sm:$0xff] }
  0x64   :  { %496 = vmatpush3.bf16.msra.mxu0 %v563_v3  ;;  %516 = vmatpush3.bf16.msra.mxu1 %v571_v8 }
  0x65   :  { %497 = vmatprep.subr.bf16.mxu0 %v732_v0  ;;  %517 = vmatprep.subr.bf16.mxu1 %v732_v0 }
  0x68   :  { %498 = vmatpush3.bf16.msra.mxu0 %v564_v5  ;;  %518 = vmatpush3.bf16.msra.mxu1 %v572_v10 }
  0x69   :  { %499 = vmatprep.subr.bf16.mxu0 %v732_v0  ;;  %519 = vmatprep.subr.bf16.mxu1 %v732_v0 }
  0x6c   :  { %500 = vmatpush3.bf16.msra.mxu0 %v565_v7  ;;  %520 = vmatpush3.bf16.msra.mxu1 %v573_v12 }
  0x6d   :  { %501 = vmatprep.subr.bf16.mxu0 %v732_v0  ;;  %521 = vmatprep.subr.bf16.mxu1 %v732_v0 }
  0x70   :  { %502 = vmatpush3.bf16.msra.mxu0 %v566_v9  ;;  %522 = vmatpush3.bf16.msra.mxu1 %v574_v15 }
  0x71   :  { %503 = vmatprep.subr.bf16.mxu0 %v732_v0  ;;  %523 = vmatprep.subr.bf16.mxu1 %v732_v0 }
  0x74   :  { %504 = vmatpush3.bf16.msra.mxu0 %v567_v11  ;;  %524 = vmatpush3.bf16.msra.mxu1 %v575_v17 }
  0x75   :  { %505 = vmatprep.subr.bf16.mxu0 %v732_v0  ;;  %525 = vmatprep.subr.bf16.mxu1 %v732_v0 }
  0x78   :  { %506 = vmatpush3.bf16.msra.mxu0 %v568_v13  ;;  %526 = vmatpush3.bf16.msra.mxu1 %v576_v18 }
  0x79   :  { %531 = vmatprep.subr.bf16.mxu0 %v732_v0 }
  0x7b   :  { %508 = vmatmul.mubr.bf16.vlgmr.msra.gmra.mrb[0].mxu0 %v104_v16 }
  0x7c   :  { %547 = vmatprep.mubr.msk.bf16.mxu0 %vm733_vm0, %v732_v0  ;;  %532 = vmatpush3.bf16.msra.mxu0 %v577_v19 }
  0x7d   :  { %533 = vmatprep.subr.bf16.mxu0 %v732_v0 }
  0x80   :  { %534 = vmatpush3.bf16.msra.mxu0 %v578_v20 }
  0x81   :  { %535 = vmatprep.subr.bf16.mxu0 %v732_v0 }
  0x84   :  { %536 = vmatpush3.bf16.msra.mxu0 %v579_v21 }
  0x85   :  { %537 = vmatprep.subr.bf16.mxu0 %v732_v0 }
  0x88   :  { %538 = vmatpush3.bf16.msra.mxu0 %v580_v22 }
  0x89   :  { %539 = vmatprep.subr.bf16.mxu0 %v732_v0 }
  0x8c   :  { %540 = vmatpush3.bf16.msra.mxu0 %v581_v23 }
  0x8d   :  { %541 = vmatprep.subr.bf16.mxu0 %v732_v0 }
  0x90   :  { %542 = vmatpush3.bf16.msra.mxu0 %v582_v24 }
  0x91   :  { %543 = vmatprep.subr.bf16.mxu0 %v732_v0 }
  0x94   :  { %544 = vmatpush3.bf16.msra.mxu0 %v583_v33 }
  0x95   :  { %545 = vmatprep.subr.bf16.mxu0 %v732_v0 }
  0x98   :  { %546 = vmatpush3.bf16.msra.mxu0 %v584_v34 }
 0x14e   :  { %v191_v26 = vpop.f32.mrb[0].mxu0 }
 0x14f   :  { %v192_v27 = vadd.f32 %v437_v25, %v191_v26  ;;  %v509_v28 = vpop.f32.mrb[1].mxu0 }
 0x150   :  { %v194_v29 = vpop.f32.mrb[2].mxu0 }
 0x151   :  { %v197_v30 = vmax.f32 %v192_v27, 0.0  ;;  %v510_v31 = vpop.f32.mrb[3].mxu0 }
 0x153   :  { %v215_v32 = vpack.c.bf16 %v197_v30, %v197_v30 }
 0x155   :  { %528 = vmatmul.mubr.bf16.vlgmr.msra.gmra.mrb[0].mxu1 %v215_v32 }
 0x228   :  { %v302_v36 = vpop.f32.mrb[0].mxu1 }
 0x229   :  { %v303_v37 = vadd.f32 %v446_v35, %v302_v36  ;;  %v529_v38 = vpop.f32.mrb[1].mxu1 }
 0x22a   :  { %v305_v39 = vpop.f32.mrb[2].mxu1 }
 0x22b   :  { %v308_v40 = vmax.f32 %v303_v37, 0.0  ;;  %v530_v41 = vpop.f32.mrb[3].mxu1 }
 0x22d   :  { %v326_v42 = vpack.c.bf16 %v308_v40, %v308_v40 }
 0x22f   :  { %548 = vmatmul.mubr.bf16.vlgmr.msra.gmra.mrb[4].mxu0 %v326_v42 }
 0x302   :  { %v413_v44 = vpop.f32.mrb[4].mxu0 }
 0x303   :  { %v414_v45 = vadd.f32 %v455_v43, %v413_v44  ;;  %v549_v46 = vpop.f32.mrb[5].mxu0 }
 0x304   :  { %v416_v47 = vpop.f32.mrb[6].mxu0 }
 0x305   :  { %419 = vst [vmem:[#allocation11] sm:$0xff] %v414_v45  ;;  %v550_v48 = vpop.f32.mrb[7].mxu0 }
 0x306   :  { %706 = shalt.err (!%p703_p2)
}
 0x307   :  { %s707_s28 = scalar_lea.hbm %s881_s5, 128 }
 0x308   :  { %p708_p3 = scmp.ne.s32.totalorder %s881_s5, %s707_s28  ;;  %p711_p4 = scmp.lt.u32.totalorder %s707_s28, %s881_s5 }
 0x30a   :  { %p713_p5 = pnand %p711_p4, %p708_p3 }
 0x30c   :  { %716 = shalt.err (!%p713_p5)
}
 0x30d   :  { %429 = dma.vmem_to_hbm [thread:$0]  %s427_s16, 128, %s881_s5, [#allocation4]  }
 0x30e   :  { %723 = dma.done.wait [#allocation4], 128  }
 0x30f   :  { %724 = vsyncadd [#allocation4], 4294967168 }
 0x310   :  { %433 = vsyncpa [#allocation3], 1 }
 0x311   :  { %434 = vsyncpa [#allocation6], 1 }
 0x312   :  { %435 = vsyncpa [#allocation9], 1 }
 0x313   :  { %436 = vsyncpa [#allocation4], 1 }

</bundles_post_ra>
